<compile_context>
chip_gen: v7x
topology: tpu7x:2x2x1
jax: 0.10.0
libtpu: 0.0.40
codegen_flags: <defaults>
</compile_context>

<pallas_src>
import functools
import math

import jax
import jax.numpy as jnp
from jax.experimental import pallas as pl
from jax.experimental.pallas import tpu as pltpu

_BIG = 2 ** 30          # "no match" sentinel for the running first-occurrence min
_MAX_SQ_NORM = 2 ** 22  # exactness bound for the f32-accumulated distance test


def _round_up(x, m):
    return -(-x // m) * m


# ----------------------------------------------------------------------------
# Pallas kernel: pairwise row-equality -> first-occurrence index per row.
# Grid = (i row tiles [parallel], j candidate tiles [arbitrary], k D tiles [arbitrary]).
# ----------------------------------------------------------------------------
def _first_occ_kernel(q_ref, c_ref, nq_ref, nc_ref, o_ref, g_acc, *, n_valid):
    """q_ref : (TM, TK) bf16  query slab      S[i*TM:(i+1)*TM, k*TK:(k+1)*TK]
       c_ref : (TN, TK) bf16  candidate slab  S[j*TN:(j+1)*TN, k*TK:(k+1)*TK]
       nq_ref: (1, TM)  f32   full-D squared norms of the query rows     (k-invariant)
       nc_ref: (TN, 1)  f32   full-D squared norms of the candidate rows (k-invariant)
       o_ref : (1, TM)  int32 running min over j of the matching candidate index
       g_acc : (TN, TM) f32   Gram accumulator over k                    (VMEM scratch)
    """
    j = pl.program_id(1)
    k = pl.program_id(2)
    tn, tm = c_ref.shape[0], q_ref.shape[0]

    @pl.when(jnp.logical_and(j == 0, k == 0))
    def _():
        o_ref[...] = jnp.full(o_ref.shape, _BIG, dtype=jnp.int32)

    @pl.when(k == 0)
    def _():
        g_acc[...] = jnp.zeros_like(g_acc)

    # MXU Gram block (native bf16 operands, exact f32 accumulation):
    #   g[c, q] += candidate_c . query_q over this D slice.
    g_acc[...] += jax.lax.dot_general(
        c_ref[...], q_ref[...], (((1,), (1,)), ((), ())),
        preferred_element_type=jnp.float32)

    @pl.when(k == pl.num_programs(2) - 1)
    def _():
        dist = nc_ref[...] + nq_ref[...] - 2.0 * g_acc[...]                 # ||c - q||^2
        cand_idx = jax.lax.broadcasted_iota(jnp.int32, (tn, tm), 0) + j * tn
        hit = jnp.logical_and(dist == 0.0, cand_idx < n_valid)              # mask padded rows
        cand = jnp.where(hit, cand_idx, _BIG)
        o_ref[...] = jnp.minimum(o_ref[...], jnp.min(cand, axis=0, keepdims=True))


def _pick_row_tiles(n):
    """(TM, TN) query/candidate row tiles.  TN tops out at 256 (fills the 2x256^2 MXU on
    v6e/v7x; v5e's 4x128^2 MXUs are full at 128).  TM tops out at 512 for candidate-stream
    reuse, capped so the 'parallel' i axis keeps >= 2 tiles where possible (v7x: 2 TCs)."""
    n128 = _round_up(max(n, 1), 128)
    if n128 <= 256:
        return 128, 128
    if n128 <= 1024:
        return 256, 256
    return 512, 256


def _pick_tk(d_pad):
    for tk in (512, 256, 128):
        if d_pad % tk == 0:
            return tk
    return 128


def _bf16_exact_planes(s_int):
    """Decompose an int32 matrix into base-256 digit planes (extra columns) so every entry has
    |v| <= 255 and is exactly representable in bf16.  Row equality is preserved (the per-value
    decomposition is a bijection).  Common case (all |v| <= 255): returns the input unchanged."""
    rem = s_int
    planes = []
    while int(jax.device_get(jnp.max(jnp.abs(rem)))) > 255:
        planes.append(rem % 256)        # digit in [0, 255]
        rem = rem // 256
    planes.append(rem)                  # final quotient, |v| <= 255
    return planes[0] if len(planes) == 1 else jnp.concatenate(planes, axis=1)


def pairwise_first_occurrence(s_int, *, tm=None, tn=None, tk=None):
    """s_int: (N, D) integer rows.  Returns (N,) int32: out[i] = min{ j : s[j, :] == s[i, :] }."""
    n = int(s_int.shape[0])
    s_int = _bf16_exact_planes(s_int.astype(jnp.int32))
    d = int(s_int.shape[1])

    auto_tm, auto_tn = _pick_row_tiles(n)
    tm = auto_tm if tm is None else tm
    tn = auto_tn if tn is None else tn
    n_pad = _round_up(n, math.lcm(tm, tn))
    d_pad = _round_up(max(d, 1), 128)
    tk = _pick_tk(d_pad) if tk is None else tk

    sf = jnp.zeros((n_pad, d_pad), jnp.float32).at[:n, :d].set(s_int.astype(jnp.float32))
    norms = jnp.sum(sf * sf, axis=1)                    # (n_pad,) exact f32 squared row norms
    max_sq = float(jax.device_get(jnp.max(norms)))
    assert max_sq < _MAX_SQ_NORM, (
        "WL signature rows too large for the exact f32-accumulated Gram equality test "
        f"(max squared row norm {max_sq} >= 2^22)")
    s_op = sf.astype(jnp.bfloat16)                      # exact: all entries are integers <= 255

    kernel = functools.partial(_first_occ_kernel, n_valid=n)
    out = pl.pallas_call(
        kernel,
        out_shape=jax.ShapeDtypeStruct((1, n_pad), jnp.int32),
        grid=(n_pad // tm, n_pad // tn, d_pad // tk),   # reduction axes (j running-min, k sum) last
        in_specs=[
            pl.BlockSpec((tm, tk), lambda i, j, k: (i, k)),   # query slab
            pl.BlockSpec((tn, tk), lambda i, j, k: (j, k)),   # candidate slab
            pl.BlockSpec((1, tm), lambda i, j, k: (0, i)),    # query norms (lane dense, k-invariant)
            pl.BlockSpec((tn, 1), lambda i, j, k: (j, 0)),    # candidate norms (k-invariant)
        ],
        out_specs=pl.BlockSpec((1, tm), lambda i, j, k: (0, i)),  # resident across j,k; lane dense
        scratch_shapes=[pltpu.VMEM((tn, tm), jnp.float32)],       # Gram accumulator over k
        compiler_params=pltpu.CompilerParams(
            dimension_semantics=("parallel", "arbitrary", "arbitrary")),
    )(s_op, s_op, norms[None, :], norms[:, None])
    return out[0, :n]


# ----------------------------------------------------------------------------
# Degree-bounded neighbor signature (replaces the dense (N, N) color histogram).
# ----------------------------------------------------------------------------
def _neighbor_color_signature(colors, edge_index, n):
    """Per node: its in-neighbors' colors sorted ascending, padded with -1 to the maximum
    in-degree.  Row equality <=> equal neighbor-color multisets, at width O(max_deg) << N."""
    src = edge_index[0].astype(jnp.int32)
    dst = edge_index[1].astype(jnp.int32)
    e = int(src.shape[0])
    if e == 0:
        return jnp.zeros((n, 0), jnp.int32)
    deg = jnp.bincount(dst, length=n)                    # in-degree per node
    max_deg = int(jax.device_get(jnp.max(deg)))
    if max_deg == 0:
        return jnp.zeros((n, 0), jnp.int32)
    nbr_color = colors[src]
    order = jnp.lexsort((nbr_color, dst))                # sort edges by (dst, neighbor color)
    sdst = dst[order]
    scol = nbr_color[order]
    start = jnp.cumsum(deg) - deg                        # exclusive prefix sum of in-degrees
    pos = jnp.arange(e, dtype=jnp.int32) - start[sdst].astype(jnp.int32)
    sig = jnp.full((n, max_deg), -1, jnp.int32)
    return sig.at[sdst, pos].set(scol)


# ----------------------------------------------------------------------------
# Forward pass
# ----------------------------------------------------------------------------
def wl_conv_multi_feature(x, edge_index):
    """x: (N, F) integer node features; edge_index: (2, E) int (row 0 = src, row 1 = dst).
    Returns (N,) int32 WL labels assigned in first-appearance order over node index.
    (Upcast to int64 / torch.long at the host boundary if required; global x64 is not enabled.)"""
    # TODO(synk): the persistent self.hashmap state across repeated forward() calls is not
    #             modeled; each call assigns fresh ids 0..K-1 (same as a freshly-reset module).
    n = int(x.shape[0])
    xi = x.astype(jnp.int32)

    # A) color id per node = first-occurrence index of its feature row (Pallas, MXU).
    colors = pairwise_first_occurrence(xi)

    # B) degree-bounded neighbor signature: O(E log E) sort + scatter, width max_deg.
    nbr_sig = _neighbor_color_signature(colors, edge_index, n)

    # C) signature = [own features | sorted neighbor colors]; first occurrence again (Pallas).
    #    Width F + max_deg is small, so this concatenate is negligible copy traffic.
    sig = jnp.concatenate([xi, nbr_sig], axis=1)
    first_occ = pairwise_first_occurrence(sig)

    # D) compress to consecutive ids in first-appearance order (tiny glue).
    is_first = (first_occ == jnp.arange(n, dtype=jnp.int32)).astype(jnp.int32)
    labels = jnp.cumsum(is_first)[first_occ] - 1
    return labels


# ----------------------------------------------------------------------------
# Pure-Python reference (mirrors the PyTorch module, keys instead of hash()).
# ----------------------------------------------------------------------------
def _reference_wl(x_np, ei_np):
    n = len(x_np)
    feats = [tuple(int(v) for v in row) for row in x_np]
    neighbors = [[] for _ in range(n)]
    for s, d in zip(list(ei_np[0]), list(ei_np[1])):
        neighbors[int(d)].append(feats[int(s)])
    hashmap, out = {}, []
    for node, nbrs in zip(feats, neighbors):
        key = (node, tuple(sorted(nbrs)))
        if key not in hashmap:
            hashmap[key] = len(hashmap)
        out.append(hashmap[key])
    return out


if __name__ == "__main__":
    key = jax.random.PRNGKey(0)
    k_x, k_e = jax.random.split(key)

    N, F, E = 16, 3, 40
    x = jax.random.randint(k_x, (N, F), 0, 3, dtype=jnp.int32)            # discrete node features
    edge_index = jax.random.randint(k_e, (2, E), 0, N, dtype=jnp.int32)   # random directed edges

    labels = wl_conv_multi_feature(x, edge_index)
    labels = jax.block_until_ready(labels)

    ref = _reference_wl(jax.device_get(x), jax.device_get(edge_index))
    got = [int(v) for v in jax.device_get(labels)]
    assert got == ref, (got, ref)

    print("KERNEL_OK")
</pallas_src>

<mosaic_0001>
module attributes {stable_mosaic.version = 11 : i64} {
  func.func @_first_occ_kernel(%arg0: i32, %arg1: i32, %arg2: i32, %arg3: memref<128x128xbf16, #tpu.memory_space<vmem>>, %arg4: memref<128x128xbf16, #tpu.memory_space<vmem>>, %arg5: memref<1x128xf32, #tpu.memory_space<vmem>>, %arg6: memref<128x1xf32, #tpu.memory_space<vmem>>, %arg7: memref<1x128xi32, #tpu.memory_space<vmem>>, %arg8: memref<128x128xf32, #tpu.memory_space<vmem>>) attributes {dimension_semantics = [#tpu.dimension_semantics<parallel>, #tpu.dimension_semantics<arbitrary>, #tpu.dimension_semantics<arbitrary>], iteration_bounds = array<i64: 1, 1, 1>, scalar_prefetch = 0 : i64, scratch_operands = 1 : i64, tpu.core_type = #tpu.core_type<tc>, window_params = [{transform_indices = @transform_0, window_bounds = array<i64: 128, 128>}, {transform_indices = @transform_1, window_bounds = array<i64: 128, 128>}, {transform_indices = @transform_2, window_bounds = array<i64: 1, 128>}, {transform_indices = @transform_3, window_bounds = array<i64: 128, 1>}, {transform_indices = @transform_4, window_bounds = array<i64: 1, 128>}]} {
    %c0_i32 = arith.constant 0 : i32
    %0 = arith.cmpi eq, %arg1, %c0_i32 : i32
    %c0_i32_0 = arith.constant 0 : i32
    %1 = arith.cmpi eq, %arg2, %c0_i32_0 : i32
    %2 = arith.andi %0, %1 : i1
    %3 = arith.extui %2 : i1 to i32
    %c0_i32_1 = arith.constant 0 : i32
    %4 = arith.cmpi ne, %3, %c0_i32_1 : i32
    scf.if %4 {
      %c1073741824_i32 = arith.constant 1073741824 : i32
      %17 = vector.broadcast %c1073741824_i32 : i32 to vector<1x128xi32>
      %c0_13 = arith.constant 0 : index
      %c0_14 = arith.constant 0 : index
      %18 = vector.load %arg7[%c0_13, %c0_14] : memref<1x128xi32, #tpu.memory_space<vmem>>, vector<1x128xi32>
      tpu.vector_store %arg7[%c0_13, %c0_14], %17 {strides = array<i32>} : memref<1x128xi32, #tpu.memory_space<vmem>>, vector<1x128xi32>,
    } else {
    }
    %c0_i32_2 = arith.constant 0 : i32
    %5 = arith.cmpi eq, %arg2, %c0_i32_2 : i32
    %6 = arith.extui %5 : i1 to i32
    %c0_i32_3 = arith.constant 0 : i32
    %7 = arith.cmpi ne, %6, %c0_i32_3 : i32
    scf.if %7 {
      %cst_13 = arith.constant 0.000000e+00 : f32
      %17 = vector.broadcast %cst_13 : f32 to vector<128x128xf32>
      %c0_14 = arith.constant 0 : index
      %c0_15 = arith.constant 0 : index
      %18 = vector.load %arg8[%c0_14, %c0_15] : memref<128x128xf32, #tpu.memory_space<vmem>>, vector<128x128xf32>
      tpu.vector_store %arg8[%c0_14, %c0_15], %17 {strides = array<i32>} : memref<128x128xf32, #tpu.memory_space<vmem>>, vector<128x128xf32>,
    } else {
    }
    %c0 = arith.constant 0 : index
    %c0_4 = arith.constant 0 : index
    %8 = vector.load %arg8[%c0, %c0_4] : memref<128x128xf32, #tpu.memory_space<vmem>>, vector<128x128xf32>
    %c0_5 = arith.constant 0 : index
    %c0_6 = arith.constant 0 : index
    %9 = vector.load %arg4[%c0_5, %c0_6] : memref<128x128xbf16, #tpu.memory_space<vmem>>, vector<128x128xbf16>
    %c0_7 = arith.constant 0 : index
    %c0_8 = arith.constant 0 : index
    %10 = vector.load %arg3[%c0_7, %c0_8] : memref<128x128xbf16, #tpu.memory_space<vmem>>, vector<128x128xbf16>
    %cst = arith.constant dense<0.000000e+00> : vector<128x128xf32>
    %11 = tpu.matmul %9, %10, %cst {dimension_numbers = #tpu.dot_dimension_numbers<[1], [1], [0], [0], [0, 0, 1, 0], [], []>} : vector<128x128xbf16>, vector<128x128xbf16>, vector<128x128xf32> -> vector<128x128xf32>
    %12 = arith.addf %8, %11 : vector<128x128xf32>
    %c0_9 = arith.constant 0 : index
    %c0_10 = arith.constant 0 : index
    %13 = vector.load %arg8[%c0_9, %c0_10] : memref<128x128xf32, #tpu.memory_space<vmem>>, vector<128x128xf32>
    tpu.vector_store %arg8[%c0_9, %c0_10], %12 {strides = array<i32>} : memref<128x128xf32, #tpu.memory_space<vmem>>, vector<128x128xf32>,
    %c0_i32_11 = arith.constant 0 : i32
    %14 = arith.cmpi eq, %arg2, %c0_i32_11 : i32
    %15 = arith.extui %14 : i1 to i32
    %c0_i32_12 = arith.constant 0 : i32
    %16 = arith.cmpi ne, %15, %c0_i32_12 : i32
    scf.if %16 {
      %c0_13 = arith.constant 0 : index
      %c0_14 = arith.constant 0 : index
      %17 = vector.load %arg6[%c0_13, %c0_14] : memref<128x1xf32, #tpu.memory_space<vmem>>, vector<128x1xf32>
      %c0_15 = arith.constant 0 : index
      %c0_16 = arith.constant 0 : index
      %18 = vector.load %arg5[%c0_15, %c0_16] : memref<1x128xf32, #tpu.memory_space<vmem>>, vector<1x128xf32>
      %19 = vector.broadcast %17 : vector<128x1xf32> to vector<128x128xf32>
      %20 = vector.broadcast %18 : vector<1x128xf32> to vector<128x128xf32>
      %21 = arith.addf %19, %20 : vector<128x128xf32>
      %c0_17 = arith.constant 0 : index
      %c0_18 = arith.constant 0 : index
      %22 = vector.load %arg8[%c0_17, %c0_18] : memref<128x128xf32, #tpu.memory_space<vmem>>, vector<128x128xf32>
      %cst_19 = arith.constant 2.000000e+00 : f32
      %23 = vector.broadcast %cst_19 : f32 to vector<128x128xf32>
      %24 = arith.mulf %23, %22 : vector<128x128xf32>
      %25 = arith.subf %21, %24 : vector<128x128xf32>
      %26 = tpu.iota {dimensions = array<i32: 0>} : vector<128x128xi32>
      %c128_i32 = arith.constant 128 : i32
      %27 = arith.muli %arg1, %c128_i32 : i32
      %28 = vector.broadcast %27 : i32 to vector<128x128xi32>
      %29 = arith.addi %26, %28 : vector<128x128xi32>
      %cst_20 = arith.constant 0.000000e+00 : f32
      %30 = vector.broadcast %cst_20 : f32 to vector<128x128xf32>
      %31 = arith.cmpf oeq, %25, %30 : vector<128x128xf32>
      %c16_i32 = arith.constant 16 : i32
      %32 = vector.broadcast %c16_i32 : i32 to vector<128x128xi32>
      %33 = arith.cmpi slt, %29, %32 : vector<128x128xi32>
      %34 = arith.andi %31, %33 : vector<128x128xi1>
      %c1073741824_i32 = arith.constant 1073741824 : i32
      %35 = vector.broadcast %c1073741824_i32 : i32 to vector<128x128xi32>
      %36 = arith.select %34, %29, %35 : vector<128x128xi1>, vector<128x128xi32>
      %c0_21 = arith.constant 0 : index
      %c0_22 = arith.constant 0 : index
      %37 = vector.load %arg7[%c0_21, %c0_22] : memref<1x128xi32, #tpu.memory_space<vmem>>, vector<1x128xi32>
      %cst_23 = arith.constant dense<2147483647> : vector<128xi32>
      %38 = vector.multi_reduction <minsi>, %36, %cst_23 [0] : vector<128x128xi32> to vector<128xi32>
      %39 = vector.shape_cast %38 : vector<128xi32> to vector<1x128xi32>
      %40 = arith.minsi %37, %39 : vector<1x128xi32>
      %c0_24 = arith.constant 0 : index
      %c0_25 = arith.constant 0 : index
      %41 = vector.load %arg7[%c0_24, %c0_25] : memref<1x128xi32, #tpu.memory_space<vmem>>, vector<1x128xi32>
      tpu.vector_store %arg7[%c0_24, %c0_25], %40 {strides = array<i32>} : memref<1x128xi32, #tpu.memory_space<vmem>>, vector<1x128xi32>,
    } else {
    }
    return
  }
  func.func @transform_0(%arg0: i32, %arg1: i32, %arg2: i32) -> (i32, i32) {
    %c0_i32 = arith.constant 0 : i32
    return %arg0, %arg2 : i32, i32
  }
  func.func @transform_1(%arg0: i32, %arg1: i32, %arg2: i32) -> (i32, i32) {
    %c0_i32 = arith.constant 0 : i32
    return %arg1, %arg2 : i32, i32
  }
  func.func @transform_2(%arg0: i32, %arg1: i32, %arg2: i32) -> (i32, i32) {
    %c0_i32 = arith.constant 0 : i32
    %c0_i32_0 = arith.constant 0 : i32
    return %c0_i32, %arg0 : i32, i32
  }
  func.func @transform_3(%arg0: i32, %arg1: i32, %arg2: i32) -> (i32, i32) {
    %c0_i32 = arith.constant 0 : i32
    %c0_i32_0 = arith.constant 0 : i32
    return %arg1, %c0_i32 : i32, i32
  }
  func.func @transform_4(%arg0: i32, %arg1: i32, %arg2: i32) -> (i32, i32) {
    %c0_i32 = arith.constant 0 : i32
    %c0_i32_0 = arith.constant 0 : i32
    return %c0_i32, %arg0 : i32, i32
  }
}

</mosaic_0001>

<bundles_post_ra>
// kernel: tpu_custom_call.1
= control target key start
LH: loop header
LB: loop body
LE: loop exit
PB: predicated region body
PF: predicated region fallthrough
CT: control target
= control target key end

     0   :  { %v769_v2 = vmov 0   ;;  %s866_s0 = inlined_call_operand.vmem [shape: bf16[128,128], index: 0, kind: input, shape index: {}]   ;;  %s867_s1 = inlined_call_operand.vmem [shape: bf16[128,128], index: 1, kind: input, shape index: {}]   ;;  %s868_s2 = inlined_call_operand.vmem [shape: f32[1,128], index: 2, kind: input, shape index: {}]   ;;  %s869_s3 = inlined_call_operand.vmem [shape: f32[128,1], index: 3, kind: input, shape index: {}]   ;;  %s870_s4 = inlined_call_operand.hbm [shape: s32[1,128], index: 4, kind: output, shape index: {}]  }
   0x1   :  { %v729_v0 = vld [vmem:[%s866_s0] sm:$0xff]   ;;  %v730_v1 = vld [vmem:[%s866_s0 + $0x8] sm:$0xff]   ;;  %728 = vset.pattern.permute.xlu0 %v769_v2  ;;  %v731_v3 = vld [vmem:[%s866_s0 + $0x10] sm:$0xff]  }
   0x2   :  { %677 = vmatprep.subr.bf16.mxu0 %v729_v0  ;;  %709 = vmatprep.subr.bf16.mxu1 %v729_v0  ;;  %v737_v4 = vld [vmem:[%s867_s1] sm:$0xff]   ;;  %v732_v6 = vld [vmem:[%s866_s0 + $0x18] sm:$0xff]  }
   0x3   :  { %678 = vmatpush3.bf16.xpose.msra.mxu0 %v729_v0  ;;  %717 = vmatpush3.bf16.xpose.msra.mxu1 %v729_v0  ;;  %v739_v5 = vld [vmem:[%s867_s1 + $0x20] sm:$0xff]  }
   0x4   :  { %679 = vmatprep.subr.bf16.mxu0 %v730_v1  ;;  %710 = vmatprep.subr.bf16.mxu1 %v730_v1  ;;  %v321_v7 = vld [vmem:[%s869_s3] sm:$0xff] }
   0x5   :  { %693 = vmatprep.mubr.bf16.mxu0 %v737_v4  ;;  %701 = vmatprep.mubr.bf16.mxu1 %v739_v5 }
   0x6   :  { %340 = vperm.xlu0 %728, %v321_v7  }
   0xb   :  { %680 = vmatpush3.bf16.xpose.msra.mxu0 %v730_v1  ;;  %718 = vmatpush3.bf16.xpose.msra.mxu1 %v730_v1 }
   0xc   :  { %681 = vmatprep.subr.bf16.mxu0 %v731_v3  ;;  %711 = vmatprep.subr.bf16.mxu1 %v731_v3 }
   0xd   :  { %9 = vsyncpa [#allocation4], 0  ;;  %v322_v8 = vld [vmem:[%s869_s3 + $0x8] sm:$0xff]  ;;  %v733_v9 = vld [vmem:[%s866_s0 + $0x20] sm:$0xff]   ;;  %v770_v19 = vmov 1073741824   ;;  %v488_v21 = vlaneseq }
   0xe   :  { %345 = vperm.xlu0 %728, %v322_v8   ;;  %v734_v10 = vld [vmem:[%s866_s0 + $0x28] sm:$0xff]   ;;  %v735_v11 = vld [vmem:[%s866_s0 + $0x30] sm:$0xff]   ;;  %v736_v12 = vld [vmem:[%s866_s0 + $0x38] sm:$0xff]   ;;  %25 = vst [vmem:[#allocation3] sm:$0x1] %v770_v19 }
   0xf   :  { %v738_v13 = vld [vmem:[%s867_s1 + $0x8] sm:$0xff]   ;;  %v741_v15 = vld [vmem:[%s867_s1 + $0x10] sm:$0xff]   ;;  %v743_v17 = vld [vmem:[%s867_s1 + $0x18] sm:$0xff]   ;;  %v489_v27 = vshrl.u32 %v488_v21, 7 }
  0x10   :  { %v740_v14 = vld [vmem:[%s867_s1 + $0x28] sm:$0xff]   ;;  %v742_v16 = vld [vmem:[%s867_s1 + $0x30] sm:$0xff]   ;;  %v744_v18 = vld [vmem:[%s867_s1 + $0x38] sm:$0xff]   ;;  %s771_s1 = smov [#allocation3]  }
  0x11   :  { %v660_v22 = vld [vmem:[%s868_s2] ss:$0 sm:$0xff]  ;;  %v490_v38 = vadd.s32 8, %v489_v27  ;;  %s636_s2 = sshll.u32 %s771_s1, 4  ;;  %s637_s2 = int_to_ptr.vmem [resolvable:$true] %s636_s2 }
  0x12   :  { %s745_s25 = scalar_lea.vmem %s637_s2, 16  ;;  %s749_s26 = scalar_lea.vmem %s637_s2, 32 }
  0x13   :  { %682 = vmatpush3.bf16.xpose.msra.mxu0 %v731_v3  ;;  %719 = vmatpush3.bf16.xpose.msra.mxu1 %v731_v3  ;;  %p746_p0 = scmp.ne.s32.totalorder %s637_s2, %s745_s25  ;;  %p750_p1 = scmp.lt.s32.totalorder %s637_s2, %s637_s2 }
  0x14   :  { %683 = vmatprep.subr.bf16.mxu0 %v732_v6  ;;  %712 = vmatprep.subr.bf16.mxu1 %v732_v6  ;;  %p751_p2 = scmp.lt.s32.totalorder %s749_s26, %s745_s25 }
  0x15   :  { %v587_v63 = vld [vmem:[#allocation3] sm:$0x1] }
  0x16   :  { %p752_p3 = por %p751_p2, %p750_p1 }
  0x18   :  { %p753_p4 = pnand %p752_p3, %p746_p0 }
  0x1b   :  { %684 = vmatpush3.bf16.xpose.msra.mxu0 %v732_v6  ;;  %720 = vmatpush3.bf16.xpose.msra.mxu1 %v732_v6 }
  0x1c   :  { %685 = vmatprep.subr.bf16.mxu0 %v733_v9  ;;  %713 = vmatprep.subr.bf16.mxu1 %v733_v9 }
  0x23   :  { %686 = vmatpush3.bf16.xpose.msra.mxu0 %v733_v9  ;;  %721 = vmatpush3.bf16.xpose.msra.mxu1 %v733_v9 }
  0x24   :  { %687 = vmatprep.subr.bf16.mxu0 %v734_v10  ;;  %714 = vmatprep.subr.bf16.mxu1 %v734_v10 }
  0x2b   :  { %688 = vmatpush3.bf16.xpose.msra.mxu0 %v734_v10  ;;  %722 = vmatpush3.bf16.xpose.msra.mxu1 %v734_v10 }
  0x2c   :  { %689 = vmatprep.subr.bf16.mxu0 %v735_v11  ;;  %715 = vmatprep.subr.bf16.mxu1 %v735_v11 }
  0x33   :  { %690 = vmatpush3.bf16.xpose.msra.mxu0 %v735_v11  ;;  %723 = vmatpush3.bf16.xpose.msra.mxu1 %v735_v11 }
  0x34   :  { %691 = vmatprep.subr.bf16.mxu0 %v736_v12  ;;  %716 = vmatprep.subr.bf16.mxu1 %v736_v12 }
  0x3b   :  { %692 = vmatpush3.bf16.xpose.msra.mxu0 %v736_v12  ;;  %724 = vmatpush3.bf16.xpose.msra.mxu1 %v736_v12 }
  0x42   :  { %694 = vmatmul.mubr.bf16.vlgmr.msra.gmra.mrb[0].mxu0 %v738_v13  ;;  %702 = vmatmul.mubr.bf16.vlgmr.msra.gmra.mrb[0].mxu1 %v740_v14 }
  0x43   :  { %697 = vmatprep.mubr.bf16.mxu0 %v741_v15  ;;  %705 = vmatprep.mubr.bf16.mxu1 %v742_v16 }
  0x4a   :  { %698 = vmatmul.mubr.bf16.gmra.mrb[4].mxu0 %v743_v17  ;;  %706 = vmatmul.mubr.bf16.gmra.mrb[4].mxu1 %v744_v18 }
  0x85   :  { %v341_v20 = vpop.permute.xlu0 %340 }
  0x86   :  { %v424_v29 = vadd.f32 %v660_v22, %v341_v20 }
  0x8d   :  { %v346_v23 = vpop.permute.xlu0 %345 }
  0x8e   :  { %v425_v35 = vadd.f32 %v660_v22, %v346_v23 }
 0x115   :  { %v695_v24 = vpop.f32.mrb[0].mxu0  ;;  %v703_v25 = vpop.f32.mrb[0].mxu1 }
 0x116   :  { %v223_v26 = vpop.f32.mrb[1].mxu0  ;;  %v255_v28 = vpop.f32.mrb[1].mxu1 }
 0x117   :  { %v456_v30 = vmul.f32 2.0, %v223_v26  ;;  %v696_v31 = vpop.f32.mrb[2].mxu0  ;;  %v704_v32 = vpop.f32.mrb[2].mxu1 }
 0x118   :  { %v226_v33 = vpop.f32.mrb[3].mxu0  ;;  %v258_v34 = vpop.f32.mrb[3].mxu1 }
 0x119   :  { %v472_v36 = vsub.f32 %v424_v29, %v456_v30  ;;  %v457_v37 = vmul.f32 2.0, %v226_v33 }
 0x11b   :  { %vm523_vm0 = vcmp.eq.f32.partialorder %v472_v36, 0.0  ;;  %v473_v39 = vsub.f32 %v425_v35, %v457_v37 }
 0x11c   :  { %v571_v40 = vsel %vm523_vm0, %v489_v27, 1073741824 }
 0x11d   :  { %vm588_vm1 = vcmp.lt.s32.totalorder %v571_v40, 1073741824  ;;  %vm524_vm2 = vcmp.eq.f32.partialorder %v473_v39, 0.0  ;;  %v699_v41 = vpop.f32.mrb[4].mxu0  ;;  %v707_v42 = vpop.f32.mrb[4].mxu1 }
 0x11e   :  { %v589_v43 = vsel %vm588_vm1, %v571_v40, 1073741824  ;;  %v572_v44 = vsel %vm524_vm2, %v490_v38, 1073741824  ;;  %v239_v45 = vpop.f32.mrb[5].mxu0  ;;  %v271_v46 = vpop.f32.mrb[5].mxu1 }
 0x11f   :  { %vm596_vm3 = vcmp.lt.s32.totalorder %v589_v43, 1073741824  ;;  %vm590_vm4 = vcmp.lt.s32.totalorder %v572_v44, 1073741824  ;;  %v700_v47 = vpop.f32.mrb[6].mxu0  ;;  %v708_v48 = vpop.f32.mrb[6].mxu1 }
 0x120   :  { %v597_v49 = vsel %vm596_vm3, %v589_v43, 1073741824  ;;  %v591_v50 = vsel %vm590_vm4, %v572_v44, 1073741824  ;;  %v242_v51 = vpop.f32.mrb[7].mxu0  ;;  %v274_v52 = vpop.f32.mrb[7].mxu1 }
 0x121   :  { %vm604_vm5 = vcmp.lt.s32.totalorder %v597_v49, 1073741824  ;;  %vm598_vm6 = vcmp.lt.s32.totalorder %v591_v50, 1073741824 }
 0x122   :  { %v599_v53 = vsel %vm598_vm6, %v591_v50, 1073741824  ;;  %v605_v54 = vsel %vm604_vm5, %v597_v49, 1073741824 }
 0x123   :  { %vm606_vm7 = vcmp.lt.s32.totalorder %v599_v53, 1073741824 }
 0x124   :  { %v607_v55 = vsel %vm606_vm7, %v599_v53, 1073741824 }
 0x125   :  { %vm612_vm8 = vcmp.lt.s32.totalorder %v605_v54, %v607_v55 }
 0x126   :  { %v613_v56 = vsel %vm612_vm8, %v605_v54, %v607_v55 }
 0x127   :  { %vm616_vm9 = vcmp.lt.s32.totalorder %v613_v56, 1073741824 }
 0x128   :  { %v617_v57 = vsel %vm616_vm9, %v613_v56, 1073741824 }
 0x129   :  { %v618_v58 = vrot.slane %v617_v57, 4 }
 0x12b   :  { %vm619_vm10 = vcmp.lt.s32.totalorder %v617_v57, %v618_v58 }
 0x12c   :  { %v620_v59 = vsel %vm619_vm10, %v617_v57, %v618_v58 }
 0x12d   :  { %v621_v60 = vrot.slane %v620_v59, 2 }
 0x12f   :  { %vm622_vm11 = vcmp.lt.s32.totalorder %v620_v59, %v621_v60 }
 0x130   :  { %v623_v61 = vsel %vm622_vm11, %v620_v59, %v621_v60 }
 0x131   :  { %v624_v62 = vrot.slane %v623_v61, 1 }
 0x133   :  { %vm625_vm12 = vcmp.lt.s32.totalorder %v623_v61, %v624_v62 }
 0x134   :  { %v626_v0 = vsel %vm625_vm12, %v623_v61, %v624_v62 }
 0x135   :  { %vm627_vm13 = vcmp.lt.s32.totalorder %v587_v63, %v626_v0 }
 0x136   :  { %v628_v1 = vsel %vm627_vm13, %v587_v63, %v626_v0 }
 0x137   :  { %629 = vst [vmem:[#allocation3] sm:$0x1] %v628_v1 }
 0x138   :  { %756 = shalt.err (!%p753_p4)
}
 0x139   :  { %s757_s29 = scalar_lea.hbm %s870_s4, 16 }
 0x13a   :  { %p758_p5 = scmp.ne.s32.totalorder %s870_s4, %s757_s29  ;;  %p761_p6 = scmp.lt.u32.totalorder %s757_s29, %s870_s4 }
 0x13c   :  { %p763_p7 = pnand %p761_p6, %p758_p5 }
 0x13e   :  { %766 = shalt.err (!%p763_p7)
}
 0x13f   :  { %639 = dma.vmem_to_hbm [thread:$0]  %s637_s2, 16, %s870_s4, [#allocation4]  }
 0x140   :  { %767 = dma.done.wait [#allocation4], 16  }
 0x141   :  { %768 = vsyncadd [#allocation4], 4294967280 }
 0x142   :  { %643 = vsyncpa [#allocation4], 1 }

</bundles_post_ra>
